<compile_context>
chip_gen: v7x
topology: tpu7x:2x2x1
jax: 0.10.0
libtpu: 0.0.40
codegen_flags: <defaults>
</compile_context>

<pallas_src>
import jax
import jax.numpy as jnp
import numpy as np
from jax.experimental import pallas as pl
from jax.experimental.pallas import tpu as pltpu


def _round_up(x, m):
    return ((x + m - 1) // m) * m


def _mlp_kernel(x_ref, *rest):
    """rest = (w0_ref, ..., w_{L-1}_ref, o_ref). Hidden boundaries are 128-padded."""
    w_refs, o_ref = rest[:-1], rest[-1]
    num_layers = len(w_refs)
    h = x_ref[...]                                           # (tm, dim_in) f32
    for l, w_ref in enumerate(w_refs):
        h = jnp.dot(h, w_ref[...], preferred_element_type=jnp.float32)   # MXU
        if l != num_layers - 1:
            h = jnp.maximum(h, 0.0)                          # ReLU (VPU), not after last
    o_ref[...] = h.astype(o_ref.dtype)                       # (tm, dim_out) store


def emo_mlp(x, weights, *, tm=512):
    """Fused MLP forward.

    x:        [..., dim_in] float32
    weights:  list of PyTorch-layout Linear weights; weights[l] has shape
              [out_features_l, in_features_l], bias-free.
    """
    orig_lead = x.shape[:-1]
    dim_in = x.shape[-1]
    x2 = x.reshape(-1, dim_in).astype(jnp.float32)
    M = x2.shape[0]
    num_layers = len(weights)

    # feature dims per layer boundary: d0 = dim_in, d_{l+1} = out_features of layer l
    dims = [dim_in] + [int(w.shape[0]) for w in weights]
    for l in range(num_layers):
        assert weights[l].shape[1] == dims[l], "weight in_features mismatch"

    # Pad only the internal boundaries (never touch HBM) to lane width 128;
    # keep the HBM-facing dims (input / output features) at their natural size.
    dims_pad = [dims[0]] + [_round_up(d, 128) for d in dims[1:-1]] + [dims[-1]]

    # row tile: multiple of 8 sublanes, no larger than the (rounded) problem
    tm = _round_up(max(tm, 8), 8)
    tm_eff = max(8, min(tm, _round_up(M, 8)))
    M_pad = _round_up(M, tm_eff)

    # ---- wrapper-side padding (rows only for x; zeros are exact through matmul+ReLU)
    x_pad = jnp.pad(x2, ((0, M_pad - M), (0, 0)))
    w_mats = []
    for l, w in enumerate(weights):
        wm = jnp.asarray(w, jnp.float32).T                   # [in_l, out_l]
        w_mats.append(jnp.pad(wm, ((0, dims_pad[l] - dims[l]),
                                   (0, dims_pad[l + 1] - dims[l + 1]))))

    # ---- BlockSpecs ---------------------------------------------------------
    in_specs = [pl.BlockSpec((tm_eff, dims_pad[0]), lambda i: (i, 0))]
    for l in range(num_layers):
        # constant block index -> weight DMA'd once, resident across the grid
        in_specs.append(
            pl.BlockSpec((dims_pad[l], dims_pad[l + 1]), lambda i: (0, 0)))
    out_spec = pl.BlockSpec((tm_eff, dims_pad[-1]), lambda i: (i, 0))

    # ---- explicit VMEM budget (safe on v7x's 64 MiB, generous on v5e/v6e) ---
    bytes_x = 2 * tm_eff * dims_pad[0] * 4                   # double-buffered input rows
    bytes_out = 2 * tm_eff * dims_pad[-1] * 4                # double-buffered output rows
    bytes_w = 2 * sum(dims_pad[l] * dims_pad[l + 1] * 4 for l in range(num_layers))
    bytes_act = 2 * tm_eff * max(dims_pad) * 4               # live intermediate h headroom
    vmem_limit = int(min(max(bytes_x + bytes_out + bytes_w + bytes_act + (4 << 20),
                             16 << 20),
                         64 << 20))

    out_pad = pl.pallas_call(
        _mlp_kernel,
        out_shape=jax.ShapeDtypeStruct((M_pad, dims_pad[-1]), jnp.float32),
        grid_spec=pltpu.PrefetchScalarGridSpec(
            num_scalar_prefetch=0,
            grid=(M_pad // tm_eff,),
            in_specs=in_specs,
            out_specs=out_spec,
        ),
        compiler_params=pltpu.CompilerParams(
            dimension_semantics=("parallel",),
            vmem_limit_bytes=vmem_limit,
        ),
    )(x_pad, *w_mats)

    out = out_pad[:M, :dims[-1]]
    return out.reshape(*orig_lead, dims[-1])


def _reference(x, weights):
    """Pure-JAX mirror of EmoMLP.forward (PyTorch weight layout, no bias)."""
    h = x
    num_layers = len(weights)
    for l, w in enumerate(weights):
        h = h @ w.T
        if l != num_layers - 1:
            h = jnp.maximum(h, 0.0)
    return h


if __name__ == "__main__":
    # small config consistent with the module
    dim_in, dim_out, dim_hidden, num_layers = 12, 4, 32, 3
    M = 200                       # rows (non-multiple of the tile to exercise padding)

    key = jax.random.PRNGKey(0)
    keys = jax.random.split(key, num_layers + 1)
    x = jax.random.normal(keys[0], (M, dim_in), jnp.float32)

    weights = []
    for l in range(num_layers):
        fin = dim_in if l == 0 else dim_hidden
        fout = dim_out if l == num_layers - 1 else dim_hidden
        bound = 1.0 / np.sqrt(fin)          # PyTorch default Linear init range
        weights.append(jax.random.uniform(keys[l + 1], (fout, fin), jnp.float32,
                                          -bound, bound))

    out = emo_mlp(x, weights, tm=128)       # tm=128 -> M_pad=256 -> 2 grid steps
    out = jax.block_until_ready(out)

    ref = _reference(x, weights)
    np.testing.assert_allclose(np.asarray(out), np.asarray(ref),
                               rtol=1e-4, atol=1e-4)
    print("KERNEL_OK")
</pallas_src>

<mosaic_0001>
module attributes {stable_mosaic.version = 11 : i64} {
  func.func @_mlp_kernel(%arg0: i32, %arg1: memref<128x12xf32, #tpu.memory_space<vmem>>, %arg2: memref<12x128xf32, #tpu.memory_space<vmem>>, %arg3: memref<128x128xf32, #tpu.memory_space<vmem>>, %arg4: memref<128x4xf32, #tpu.memory_space<vmem>>, %arg5: memref<128x4xf32, #tpu.memory_space<vmem>>) attributes {dimension_semantics = [#tpu.dimension_semantics<parallel>], iteration_bounds = array<i64: 2>, scalar_prefetch = 0 : i64, scratch_operands = 0 : i64, tpu.core_type = #tpu.core_type<tc>, window_params = [{transform_indices = @transform_0, window_bounds = array<i64: 128, 12>}, {pipeline_mode = #tpu.pipeline_mode<synchronous>, transform_indices = @transform_1, window_bounds = array<i64: 12, 128>}, {pipeline_mode = #tpu.pipeline_mode<synchronous>, transform_indices = @transform_2, window_bounds = array<i64: 128, 128>}, {pipeline_mode = #tpu.pipeline_mode<synchronous>, transform_indices = @transform_3, window_bounds = array<i64: 128, 4>}, {transform_indices = @transform_4, window_bounds = array<i64: 128, 4>}]} {
    %c0 = arith.constant 0 : index
    %c0_0 = arith.constant 0 : index
    %0 = vector.load %arg1[%c0, %c0_0] : memref<128x12xf32, #tpu.memory_space<vmem>>, vector<128x12xf32>
    %c0_1 = arith.constant 0 : index
    %c0_2 = arith.constant 0 : index
    %1 = vector.load %arg2[%c0_1, %c0_2] : memref<12x128xf32, #tpu.memory_space<vmem>>, vector<12x128xf32>
    %cst = arith.constant dense<0.000000e+00> : vector<128x128xf32>
    %2 = tpu.matmul %0, %1, %cst {dimension_numbers = #tpu.dot_dimension_numbers<[1], [0], [0], [1], [0, 0, 1, 1], [], []>} : vector<128x12xf32>, vector<12x128xf32>, vector<128x128xf32> -> vector<128x128xf32>
    %cst_3 = arith.constant 0.000000e+00 : f32
    %3 = vector.broadcast %cst_3 : f32 to vector<128x128xf32>
    %4 = arith.maximumf %2, %3 : vector<128x128xf32>
    %c0_4 = arith.constant 0 : index
    %c0_5 = arith.constant 0 : index
    %5 = vector.load %arg3[%c0_4, %c0_5] : memref<128x128xf32, #tpu.memory_space<vmem>>, vector<128x128xf32>
    %cst_6 = arith.constant dense<0.000000e+00> : vector<128x128xf32>
    %6 = tpu.matmul %4, %5, %cst_6 {dimension_numbers = #tpu.dot_dimension_numbers<[1], [0], [0], [1], [0, 0, 1, 1], [], []>} : vector<128x128xf32>, vector<128x128xf32>, vector<128x128xf32> -> vector<128x128xf32>
    %cst_7 = arith.constant 0.000000e+00 : f32
    %7 = vector.broadcast %cst_7 : f32 to vector<128x128xf32>
    %8 = arith.maximumf %6, %7 : vector<128x128xf32>
    %c0_8 = arith.constant 0 : index
    %c0_9 = arith.constant 0 : index
    %9 = vector.load %arg4[%c0_8, %c0_9] : memref<128x4xf32, #tpu.memory_space<vmem>>, vector<128x4xf32>
    %cst_10 = arith.constant dense<0.000000e+00> : vector<128x4xf32>
    %10 = tpu.matmul %8, %9, %cst_10 {dimension_numbers = #tpu.dot_dimension_numbers<[1], [0], [0], [1], [0, 0, 1, 1], [], []>} : vector<128x128xf32>, vector<128x4xf32>, vector<128x4xf32> -> vector<128x4xf32>
    %c0_11 = arith.constant 0 : index
    %c0_12 = arith.constant 0 : index
    %11 = vector.load %arg5[%c0_11, %c0_12] : memref<128x4xf32, #tpu.memory_space<vmem>>, vector<128x4xf32>
    tpu.vector_store %arg5[%c0_11, %c0_12], %10 {strides = array<i32>} : memref<128x4xf32, #tpu.memory_space<vmem>>, vector<128x4xf32>,
    return
  }
  func.func @transform_0(%arg0: i32) -> (i32, i32) {
    %c0_i32 = arith.constant 0 : i32
    %c0_i32_0 = arith.constant 0 : i32
    return %arg0, %c0_i32 : i32, i32
  }
  func.func @transform_1(%arg0: i32) -> (i32, i32) {
    %c0_i32 = arith.constant 0 : i32
    %c0_i32_0 = arith.constant 0 : i32
    %c0_i32_1 = arith.constant 0 : i32
    return %c0_i32, %c0_i32_0 : i32, i32
  }
  func.func @transform_2(%arg0: i32) -> (i32, i32) {
    %c0_i32 = arith.constant 0 : i32
    %c0_i32_0 = arith.constant 0 : i32
    %c0_i32_1 = arith.constant 0 : i32
    return %c0_i32, %c0_i32_0 : i32, i32
  }
  func.func @transform_3(%arg0: i32) -> (i32, i32) {
    %c0_i32 = arith.constant 0 : i32
    %c0_i32_0 = arith.constant 0 : i32
    %c0_i32_1 = arith.constant 0 : i32
    return %c0_i32, %c0_i32_0 : i32, i32
  }
  func.func @transform_4(%arg0: i32) -> (i32, i32) {
    %c0_i32 = arith.constant 0 : i32
    %c0_i32_0 = arith.constant 0 : i32
    return %arg0, %c0_i32 : i32, i32
  }
}

</mosaic_0001>

<bundles_post_ra>
// kernel: tpu_custom_call.1
= control target key start
LH: loop header
LB: loop body
LE: loop exit
PB: predicated region body
PF: predicated region fallthrough
CT: control target
= control target key end

     0   :  { %s1207_s15 = smov 0   ;;  %s1401_s0 = inlined_call_operand.vmem [shape: f32[256,12], index: 0, kind: input, shape index: {}]   ;;  %s1402_s1 = inlined_call_operand.vmem [shape: f32[12,128], index: 1, kind: input, shape index: {}]   ;;  %s1403_s2 = inlined_call_operand.vmem [shape: f32[128,128], index: 2, kind: input, shape index: {}]   ;;  %s1404_s3 = inlined_call_operand.vmem [shape: f32[128,4], index: 3, kind: input, shape index: {}]   ;;  %s1405_s4 = inlined_call_operand.vmem [shape: f32[256,4], index: 4, kind: output, shape index: {}]  }
   0x1 LB: > { %s844_s16 = sadd.s32 4294967295, %s1179_s15   ;;  %p848_p0 = scmp.ge.s32.totalorder %s1179_s15, 1  ;;  %s1179_s15 = sphi %s1207_s15, %s14_s15  }
   0x2   : > { %p163_p1 = scmp.lt.s32.totalorder %s1179_s15, 3 }
   0x4   : > { %p164_p2 = pnand %p848_p0, %p163_p1 }
   0x5   : > { %v217_v0 = vld [vmem:[%s1402_s1] sm:$0xff] (!%p164_p2)  ;;  %v218_v1 = vld [vmem:[%s1402_s1 + $0x8] sm:$0xf] (!%p164_p2)  ;;  %vm268_vm0 = vcmask (!%p164_p2), 1043456   ;;  %s849_s21 = sshll.u32 (!%p164_p2), %s844_s16, 4  ;;  %vm1181_vm1 = vmmov (!%p164_p2), 1  }
   0x6   : > { %167 = sbr.rel (%p164_p2) target bundleno = 692 (0x2b4), region = 36  ;;  %v1094_v2 = vpack.c.bf16 (!%p164_p2), %v218_v1, %v217_v0  ;;  %vm1095_vm2 = vmpackc.low (!%p164_p2), %vm268_vm0, %vm1181_vm1  ;;  %p190_p3 = scmp.lt.s32.totalorder (!%p164_p2), %s849_s21, 31  ;;  %v433_v3 = vld [vmem:[%s1403_s2] sm:$0xff] (!%p164_p2)  ;;  %v434_v4 = vld [vmem:[%s1403_s2 + $0x8] sm:$0xff] (!%p164_p2)  ;;  %vm219_vm3 = vcmask (!%p164_p2), 97280   ;;  %vm771_vm4 = vcmask (!%p164_p2), 31744  }
   0x7   : > { %v1100_v5 = vpack.c.bf16 (!%p164_p2), %v434_v4, %v433_v3  ;;  %v435_v6 = vld [vmem:[%s1403_s2 + $0x10] sm:$0xff] (!%p164_p2)  ;;  %v436_v7 = vld [vmem:[%s1403_s2 + $0x18] sm:$0xff] (!%p164_p2)  ;;  %v437_v9 = vld [vmem:[%s1403_s2 + $0x20] sm:$0xff] (!%p164_p2) }
   0x8   : > { %1096 = vmatprep.subr.msk.bf16.mxu0 (!%p164_p2), %vm1095_vm2, %v1094_v2  ;;  %v1104_v8 = vpack.c.bf16 (!%p164_p2), %v436_v7, %v435_v6  ;;  %v438_v10 = vld [vmem:[%s1403_s2 + $0x28] sm:$0xff] (!%p164_p2)  ;;  %v439_v12 = vld [vmem:[%s1403_s2 + $0x30] sm:$0xff] (!%p164_p2)  ;;  %v440_v13 = vld [vmem:[%s1403_s2 + $0x38] sm:$0xff] (!%p164_p2) }
   0x9   : > { %1099 = vmatpush3.bf16.msk.msra.mxu0 (!%p164_p2), %vm1095_vm2, %v1094_v2  ;;  %1101 = vmatprep.subr.bf16.mxu1 (!%p164_p2), %v1100_v5  ;;  %v1108_v11 = vpack.c.bf16 (!%p164_p2), %v438_v10, %v437_v9  ;;  %v1112_v18 = vpack.c.bf16 (!%p164_p2), %v440_v13, %v439_v12  ;;  %v441_v20 = vld [vmem:[%s1403_s2 + $0x40] sm:$0xff] (!%p164_p2)  ;;  %v442_v21 = vld [vmem:[%s1403_s2 + $0x48] sm:$0xff] (!%p164_p2)  ;;  %v443_v25 = vld [vmem:[%s1403_s2 + $0x50] sm:$0xff] (!%p164_p2) }
   0xa   : > { %1103 = vmatpush3.bf16.msra.mxu1 (!%p164_p2), %v1100_v5  ;;  %v1116_v23 = vpack.c.bf16 (!%p164_p2), %v442_v21, %v441_v20  ;;  %v444_v26 = vld [vmem:[%s1403_s2 + $0x58] sm:$0xff] (!%p164_p2)  ;;  %v445_v30 = vld [vmem:[%s1403_s2 + $0x60] sm:$0xff] (!%p164_p2)  ;;  %v446_v31 = vld [vmem:[%s1403_s2 + $0x68] sm:$0xff] (!%p164_p2) }
   0xb   : > { %1105 = vmatprep.subr.bf16.mxu1 (!%p164_p2), %v1104_v8  ;;  %v1120_v28 = vpack.c.bf16 (!%p164_p2), %v444_v26, %v443_v25  ;;  %v1124_v33 = vpack.c.bf16 (!%p164_p2), %v446_v31, %v445_v30  ;;  %v447_v40 = vld [vmem:[%s1403_s2 + $0x70] sm:$0xff] (!%p164_p2)  ;;  %v448_v41 = vld [vmem:[%s1403_s2 + $0x78] sm:$0xff] (!%p164_p2)  ;;  %v610_v43 = vld [vmem:[%s1404_s3] sm:$0xff] (!%p164_p2) }
   0xc   : > { %v1128_v42 = vpack.c.bf16 (!%p164_p2), %v448_v41, %v447_v40  ;;  %v611_v44 = vld [vmem:[%s1404_s3 + $0x8] sm:$0xff] (!%p164_p2)  ;;  %v612_v45 = vld [vmem:[%s1404_s3 + $0x10] sm:$0xff] (!%p164_p2)  ;;  %v613_v47 = vld [vmem:[%s1404_s3 + $0x18] sm:$0xff] (!%p164_p2) }
   0xd   : > { %s1407_s21 = smov (!%p190_p3, %s849_s21), 31  ;;  %v1132_v46 = vpack.c.bf16 %v611_v44, %v610_v43  ;;  %v1136_v48 = vpack.c.bf16 %v613_v47, %v612_v45  ;;  %v614_v49 = vld [vmem:[%s1404_s3 + $0x20] sm:$0xff]  ;;  %v615_v50 = vld [vmem:[%s1404_s3 + $0x28] sm:$0xff]  ;;  %v616_v52 = vld [vmem:[%s1404_s3 + $0x30] sm:$0xff] }
   0xe   : > { %s850_s8 = sshll.u32 %s1407_s21, 3  ;;  %1107 = vmatpush3.bf16.msra.mxu1 %v1104_v8  ;;  %v1140_v51 = vpack.c.bf16 %v615_v50, %v614_v49  ;;  %v617_v53 = vld [vmem:[%s1404_s3 + $0x38] sm:$0xff]  ;;  %v618_v55 = vld [vmem:[%s1404_s3 + $0x40] sm:$0xff]  ;;  %v619_v56 = vld [vmem:[%s1404_s3 + $0x48] sm:$0xff] }
   0xf   : > { %s1247_s11 = scalar_lea.vmem %s1401_s0, %s850_s8  ;;  %1109 = vmatprep.subr.bf16.mxu1 %v1108_v11  ;;  %1133 = vmatprep.subr.bf16.mxu0 %v1132_v46  ;;  %v1144_v54 = vpack.c.bf16 %v617_v53, %v616_v52  ;;  %v1148_v57 = vpack.c.bf16 %v619_v56, %v618_v55  ;;  %v620_v58 = vld [vmem:[%s1404_s3 + $0x50] sm:$0xff]  ;;  %v621_v59 = vld [vmem:[%s1404_s3 + $0x58] sm:$0xff]  ;;  %v622_v61 = vld [vmem:[%s1404_s3 + $0x60] sm:$0xff]  ;;  %s1364_s22 = scalar_lea.vmem %s1405_s4, %s850_s8 }
  0x10   : > { %v201_v14 = vld [vmem:[%s1247_s11] sm:$0xff]  ;;  %v202_v15 = vld [vmem:[%s1247_s11 + $0x8] sm:$0xff]  ;;  %v203_v16 = vld [vmem:[%s1247_s11 + $0x10] sm:$0xff]  ;;  %v1152_v60 = vpack.c.bf16 %v621_v59, %v620_v58 }
  0x11   : > { %958 = vmatprep.mubr.msk.f32.mxu0 %vm219_vm3, %v201_v14  ;;  %v204_v17 = vld [vmem:[%s1247_s11 + $0x18] sm:$0xff]  ;;  %v205_v19 = vld [vmem:[%s1247_s11 + $0x20] sm:$0xff]  ;;  %v206_v22 = vld [vmem:[%s1247_s11 + $0x28] sm:$0xff] }
  0x12   : > { %959 = vmatmul.mubr.msk.f32.vlgmr.msra.gmra.mrb[0].mxu0 %vm219_vm3, %v202_v15  ;;  %1111 = vmatpush3.bf16.msra.mxu1 %v1108_v11  ;;  %v207_v24 = vld [vmem:[%s1247_s11 + $0x30] sm:$0xff]  ;;  %v208_v27 = vld [vmem:[%s1247_s11 + $0x38] sm:$0xff]  ;;  %v209_v29 = vld [vmem:[%s1247_s11 + $0x40] sm:$0xff] }
  0x13   : > { %961 = vmatprep.mubr.msk.f32.mxu0 %vm219_vm3, %v203_v16  ;;  %1113 = vmatprep.subr.bf16.mxu1 %v1112_v18  ;;  %v210_v32 = vld [vmem:[%s1247_s11 + $0x48] sm:$0xff]  ;;  %v211_v34 = vld [vmem:[%s1247_s11 + $0x50] sm:$0xff]  ;;  %v212_v35 = vld [vmem:[%s1247_s11 + $0x58] sm:$0xff] }
  0x14   : > { %v213_v36 = vld [vmem:[%s1247_s11 + $0x60] sm:$0xff]  ;;  %v214_v37 = vld [vmem:[%s1247_s11 + $0x68] sm:$0xff]  ;;  %v215_v38 = vld [vmem:[%s1247_s11 + $0x70] sm:$0xff]  ;;  %1135 = vmatpush3.bf16.msra.mxu0 %v1132_v46 }
  0x15   : > { %v216_v39 = vld [vmem:[%s1247_s11 + $0x78] sm:$0xff]  ;;  %1137 = vmatprep.subr.bf16.mxu0 %v1136_v48  ;;  %v623_v62 = vld [vmem:[%s1404_s3 + $0x68] sm:$0xff] }
  0x16   : > { %962 = vmatmul.mubr.msk.f32.gmra.mrb[2].mxu0 %vm219_vm3, %v204_v17  ;;  %1115 = vmatpush3.bf16.msra.mxu1 %v1112_v18  ;;  %v1156_v63 = vpack.c.bf16 %v623_v62, %v622_v61 }
  0x17   : > { %964 = vmatprep.mubr.msk.f32.mxu0 %vm219_vm3, %v205_v19  ;;  %1117 = vmatprep.subr.bf16.mxu1 %v1116_v23 }
  0x18   : > { %1139 = vmatpush3.bf16.msra.mxu0 %v1136_v48 }
  0x19   : > { %1141 = vmatprep.subr.bf16.mxu0 %v1140_v51 }
  0x1a   : > { %965 = vmatmul.mubr.msk.f32.gmra.mrb[4].mxu0 %vm219_vm3, %v206_v22  ;;  %1119 = vmatpush3.bf16.msra.mxu1 %v1116_v23 }
  0x1b   : > { %967 = vmatprep.mubr.msk.f32.mxu0 %vm219_vm3, %v207_v24  ;;  %1121 = vmatprep.subr.bf16.mxu1 %v1120_v28 }
  0x1c   : > { %1143 = vmatpush3.bf16.msra.mxu0 %v1140_v51 }
  0x1d   : > { %1145 = vmatprep.subr.bf16.mxu0 %v1144_v54 }
  0x1e   : > { %968 = vmatmul.mubr.msk.f32.gmra.mrb[6].mxu0 %vm219_vm3, %v208_v27  ;;  %1123 = vmatpush3.bf16.msra.mxu1 %v1120_v28 }
  0x1f   : > { %970 = vmatprep.mubr.msk.f32.mxu0 %vm219_vm3, %v209_v29  ;;  %1125 = vmatprep.subr.bf16.mxu1 %v1124_v33 }
  0x20   : > { %1147 = vmatpush3.bf16.msra.mxu0 %v1144_v54 }
  0x21   : > { %1149 = vmatprep.subr.bf16.mxu0 %v1148_v57 }
  0x22   : > { %971 = vmatmul.mubr.msk.f32.gmra.mrb[8].mxu0 %vm219_vm3, %v210_v32  ;;  %1127 = vmatpush3.bf16.msra.mxu1 %v1124_v33  ;;  %v624_v32 = vld [vmem:[%s1404_s3 + $0x70] sm:$0xff]  ;;  %v625_v33 = vld [vmem:[%s1404_s3 + $0x78] sm:$0xff] }
  0x23   : > { %973 = vmatprep.mubr.msk.f32.mxu0 %vm219_vm3, %v211_v34  ;;  %1129 = vmatprep.subr.bf16.mxu1 %v1128_v42  ;;  %v1160_v34 = vpack.c.bf16 %v625_v33, %v624_v32 }
  0x24   : > { %1151 = vmatpush3.bf16.msra.mxu0 %v1148_v57 }
  0x25   : > { %1153 = vmatprep.subr.bf16.mxu0 %v1152_v60 }
  0x26   : > { %974 = vmatmul.mubr.msk.f32.gmra.mrb[10].mxu0 %vm219_vm3, %v212_v35  ;;  %1131 = vmatpush3.bf16.msra.mxu1 %v1128_v42 }
  0x27   : > { %976 = vmatprep.mubr.msk.f32.mxu0 %vm219_vm3, %v213_v36 }
  0x28   : > { %1155 = vmatpush3.bf16.msra.mxu0 %v1152_v60 }
  0x29   : > { %1157 = vmatprep.subr.bf16.mxu0 %v1156_v63 }
  0x2a   : > { %977 = vmatmul.mubr.msk.f32.gmra.mrb[12].mxu0 %vm219_vm3, %v214_v37 }
  0x2b   : > { %979 = vmatprep.mubr.msk.f32.mxu0 %vm219_vm3, %v215_v38 }
  0x2c   : > { %1159 = vmatpush3.bf16.msra.mxu0 %v1156_v63 }
  0x2d   : > { %1161 = vmatprep.subr.bf16.mxu0 %v1160_v34 }
  0x2e   : > { %980 = vmatmul.mubr.msk.f32.gmra.mrb[14].mxu0 %vm219_vm3, %v216_v39 }
  0x30   : > { %1163 = vmatpush3.bf16.msra.mxu0 %v1160_v34 }
  0xe5   : > { %v960_v0 = vpop.f32.mrb[0].mxu0 }
  0xe6   : > { %v338_v1 = vpop.f32.mrb[1].mxu0  ;;  %v418_v3 = vmax.f32 %v960_v0, 0.0 }
  0xe7   : > { %v417_v2 = vmax.f32 %v338_v1, 0.0 }
  0xe9   : > { %v963_v4 = vpop.f32.mrb[2].mxu0  ;;  %1014 = vmatprep.mubr.f32.mxu1 %v417_v2 }
  0xea   : > { %v348_v5 = vpop.f32.mrb[3].mxu0  ;;  %1015 = vmatmul.mubr.f32.vlgmr.msra.gmra.mrb[0].mxu1 %v418_v3  ;;  %v420_v7 = vmax.f32 %v963_v4, 0.0 }
  0xeb   : > { %v419_v6 = vmax.f32 %v348_v5, 0.0 }
  0xed   : > { %v966_v8 = vpop.f32.mrb[4].mxu0  ;;  %1017 = vmatprep.mubr.f32.mxu1 %v419_v6 }
  0xee   : > { %v358_v9 = vpop.f32.mrb[5].mxu0  ;;  %1018 = vmatmul.mubr.f32.gmra.mrb[2].mxu1 %v420_v7  ;;  %v422_v11 = vmax.f32 %v966_v8, 0.0 }
  0xef   : > { %v421_v10 = vmax.f32 %v358_v9, 0.0 }
  0xf1   : > { %v969_v12 = vpop.f32.mrb[6].mxu0  ;;  %1020 = vmatprep.mubr.f32.mxu1 %v421_v10 }
  0xf2   : > { %v368_v13 = vpop.f32.mrb[7].mxu0  ;;  %1021 = vmatmul.mubr.f32.gmra.mrb[4].mxu1 %v422_v11  ;;  %v424_v15 = vmax.f32 %v969_v12, 0.0 }
  0xf3   : > { %v423_v14 = vmax.f32 %v368_v13, 0.0 }
  0xf5   : > { %v972_v16 = vpop.f32.mrb[8].mxu0  ;;  %1023 = vmatprep.mubr.f32.mxu1 %v423_v14 }
  0xf6   : > { %v378_v17 = vpop.f32.mrb[9].mxu0  ;;  %1024 = vmatmul.mubr.f32.gmra.mrb[6].mxu1 %v424_v15  ;;  %v426_v19 = vmax.f32 %v972_v16, 0.0 }
  0xf7   : > { %v425_v18 = vmax.f32 %v378_v17, 0.0 }
  0xf9   : > { %v975_v20 = vpop.f32.mrb[10].mxu0  ;;  %1026 = vmatprep.mubr.f32.mxu1 %v425_v18 }
  0xfa   : > { %v388_v21 = vpop.f32.mrb[11].mxu0  ;;  %1027 = vmatmul.mubr.f32.gmra.mrb[8].mxu1 %v426_v19  ;;  %v428_v23 = vmax.f32 %v975_v20, 0.0 }
  0xfb   : > { %v427_v22 = vmax.f32 %v388_v21, 0.0 }
  0xfd   : > { %v978_v24 = vpop.f32.mrb[12].mxu0  ;;  %1029 = vmatprep.mubr.f32.mxu1 %v427_v22 }
  0xfe   : > { %v398_v25 = vpop.f32.mrb[13].mxu0  ;;  %1030 = vmatmul.mubr.f32.gmra.mrb[10].mxu1 %v428_v23  ;;  %v430_v27 = vmax.f32 %v978_v24, 0.0 }
  0xff   : > { %v429_v26 = vmax.f32 %v398_v25, 0.0 }
 0x101   : > { %v981_v28 = vpop.f32.mrb[14].mxu0  ;;  %1032 = vmatprep.mubr.f32.mxu1 %v429_v26 }
 0x102   : > { %v408_v29 = vpop.f32.mrb[15].mxu0  ;;  %1033 = vmatmul.mubr.f32.gmra.mrb[12].mxu1 %v430_v27  ;;  %v432_v31 = vmax.f32 %v981_v28, 0.0 }
 0x103   : > { %v431_v30 = vmax.f32 %v408_v29, 0.0 }
 0x105   : > { %1035 = vmatprep.mubr.f32.mxu1 %v431_v30 }
 0x106   : > { %1036 = vmatmul.mubr.f32.gmra.mrb[14].mxu1 %v432_v31 }
 0x1bd   : > { %v1016_v35 = vpop.f32.mrb[0].mxu1 }
 0x1be   : > { %v515_v36 = vpop.f32.mrb[1].mxu1  ;;  %v595_v38 = vmax.f32 %v1016_v35, 0.0 }
 0x1bf   : > { %v594_v37 = vmax.f32 %v515_v36, 0.0 }
 0x1c1   : > { %v1019_v39 = vpop.f32.mrb[2].mxu1  ;;  %1070 = vmatprep.mubr.f32.mxu0 %v594_v37 }
 0x1c2   : > { %v525_v40 = vpop.f32.mrb[3].mxu1  ;;  %1071 = vmatmul.mubr.f32.vlgmr.msra.gmra.mrb[16].mxu0 %v595_v38  ;;  %v597_v42 = vmax.f32 %v1019_v39, 0.0 }
 0x1c3   : > { %v596_v41 = vmax.f32 %v525_v40, 0.0 }
 0x1c5   : > { %v1022_v43 = vpop.f32.mrb[4].mxu1  ;;  %1073 = vmatprep.mubr.f32.mxu0 %v596_v41 }
 0x1c6   : > { %v535_v44 = vpop.f32.mrb[5].mxu1  ;;  %1074 = vmatmul.mubr.f32.gmra.mrb[18].mxu0 %v597_v42  ;;  %v599_v46 = vmax.f32 %v1022_v43, 0.0 }
 0x1c7   : > { %v598_v45 = vmax.f32 %v535_v44, 0.0 }
 0x1c9   : > { %v1025_v47 = vpop.f32.mrb[6].mxu1  ;;  %1076 = vmatprep.mubr.f32.mxu0 %v598_v45 }
 0x1ca   : > { %v545_v48 = vpop.f32.mrb[7].mxu1  ;;  %1077 = vmatmul.mubr.f32.gmra.mrb[20].mxu0 %v599_v46  ;;  %v601_v50 = vmax.f32 %v1025_v47, 0.0 }
 0x1cb   : > { %v600_v49 = vmax.f32 %v545_v48, 0.0 }
 0x1cd   : > { %v1028_v51 = vpop.f32.mrb[8].mxu1  ;;  %1079 = vmatprep.mubr.f32.mxu0 %v600_v49 }
 0x1ce   : > { %v555_v52 = vpop.f32.mrb[9].mxu1  ;;  %1080 = vmatmul.mubr.f32.gmra.mrb[22].mxu0 %v601_v50  ;;  %v603_v54 = vmax.f32 %v1028_v51, 0.0 }
 0x1cf   : > { %v602_v53 = vmax.f32 %v555_v52, 0.0 }
 0x1d1   : > { %v1031_v55 = vpop.f32.mrb[10].mxu1  ;;  %1082 = vmatprep.mubr.f32.mxu0 %v602_v53 }
 0x1d2   : > { %v565_v56 = vpop.f32.mrb[11].mxu1  ;;  %1083 = vmatmul.mubr.f32.gmra.mrb[24].mxu0 %v603_v54  ;;  %v605_v58 = vmax.f32 %v1031_v55, 0.0 }
 0x1d3   : > { %v604_v57 = vmax.f32 %v565_v56, 0.0 }
 0x1d5   : > { %v1034_v59 = vpop.f32.mrb[12].mxu1  ;;  %1085 = vmatprep.mubr.f32.mxu0 %v604_v57 }
 0x1d6   : > { %v575_v60 = vpop.f32.mrb[13].mxu1  ;;  %1086 = vmatmul.mubr.f32.gmra.mrb[26].mxu0 %v605_v58  ;;  %v607_v62 = vmax.f32 %v1034_v59, 0.0 }
 0x1d7   : > { %v606_v61 = vmax.f32 %v575_v60, 0.0 }
 0x1d9   : > { %v1037_v63 = vpop.f32.mrb[14].mxu1  ;;  %1088 = vmatprep.mubr.f32.mxu0 %v606_v61 }
 0x1da   : > { %v585_v0 = vpop.f32.mrb[15].mxu1  ;;  %1089 = vmatmul.mubr.f32.gmra.mrb[28].mxu0 %v607_v62  ;;  %v609_v2 = vmax.f32 %v1037_v63, 0.0 }
 0x1db   : > { %v608_v1 = vmax.f32 %v585_v0, 0.0 }
 0x1dd   : > { %1091 = vmatprep.mubr.f32.mxu0 %v608_v1 }
 0x1de   : > { %1092 = vmatmul.mubr.f32.gmra.mrb[30].mxu0 %v609_v2 }
 0x295   : > { %v1072_v3 = vpop.f32.mrb[16].mxu0 }
 0x296   : > { %773 = vst.msk [vmem:[%s1364_s22 + $0x8] sm:$0xff] %vm771_vm4, %v1072_v3  ;;  %v692_v4 = vpop.f32.mrb[17].mxu0 }
 0x297   : > { %772 = vst.msk [vmem:[%s1364_s22] sm:$0xff] %vm771_vm4, %v692_v4 }
 0x299   : > { %v1075_v5 = vpop.f32.mrb[18].mxu0 }
 0x29a   : > { %775 = vst.msk [vmem:[%s1364_s22 + $0x18] sm:$0xff] %vm771_vm4, %v1075_v5  ;;  %v702_v6 = vpop.f32.mrb[19].mxu0 }
 0x29b   : > { %774 = vst.msk [vmem:[%s1364_s22 + $0x10] sm:$0xff] %vm771_vm4, %v702_v6 }
 0x29d   : > { %v1078_v7 = vpop.f32.mrb[20].mxu0 }
 0x29e   : > { %777 = vst.msk [vmem:[%s1364_s22 + $0x28] sm:$0xff] %vm771_vm4, %v1078_v7  ;;  %v712_v8 = vpop.f32.mrb[21].mxu0 }
 0x29f   : > { %776 = vst.msk [vmem:[%s1364_s22 + $0x20] sm:$0xff] %vm771_vm4, %v712_v8 }
 0x2a1   : > { %v1081_v9 = vpop.f32.mrb[22].mxu0 }
 0x2a2   : > { %779 = vst.msk [vmem:[%s1364_s22 + $0x38] sm:$0xff] %vm771_vm4, %v1081_v9  ;;  %v722_v10 = vpop.f32.mrb[23].mxu0 }
 0x2a3   : > { %778 = vst.msk [vmem:[%s1364_s22 + $0x30] sm:$0xff] %vm771_vm4, %v722_v10 }
 0x2a5   : > { %v1084_v11 = vpop.f32.mrb[24].mxu0 }
 0x2a6   : > { %781 = vst.msk [vmem:[%s1364_s22 + $0x48] sm:$0xff] %vm771_vm4, %v1084_v11  ;;  %v732_v12 = vpop.f32.mrb[25].mxu0 }
 0x2a7   : > { %780 = vst.msk [vmem:[%s1364_s22 + $0x40] sm:$0xff] %vm771_vm4, %v732_v12 }
 0x2a9   : > { %v1087_v13 = vpop.f32.mrb[26].mxu0 }
 0x2aa   : > { %783 = vst.msk [vmem:[%s1364_s22 + $0x58] sm:$0xff] %vm771_vm4, %v1087_v13  ;;  %v742_v14 = vpop.f32.mrb[27].mxu0 }
 0x2ab   : > { %782 = vst.msk [vmem:[%s1364_s22 + $0x50] sm:$0xff] %vm771_vm4, %v742_v14 }
 0x2ad   : > { %v1090_v15 = vpop.f32.mrb[28].mxu0 }
 0x2ae   : > { %785 = vst.msk [vmem:[%s1364_s22 + $0x68] sm:$0xff] %vm771_vm4, %v1090_v15  ;;  %v752_v16 = vpop.f32.mrb[29].mxu0 }
 0x2af   : > { %784 = vst.msk [vmem:[%s1364_s22 + $0x60] sm:$0xff] %vm771_vm4, %v752_v16 }
 0x2b1   : > { %v1093_v17 = vpop.f32.mrb[30].mxu0 }
 0x2b2   : > { %787 = vst.msk [vmem:[%s1364_s22 + $0x78] sm:$0xff] %vm771_vm4, %v1093_v17  ;;  %v762_v18 = vpop.f32.mrb[31].mxu0 }
 0x2b3   : > { %786 = vst.msk [vmem:[%s1364_s22 + $0x70] sm:$0xff] %vm771_vm4, %v762_v18 }
 0x2b4 PF: > { %s14_s15 = sadd.s32 1, %s1179_s15  }
 0x2b5   : > { %p11_p4 = scmp.ge.s32.totalorder %s14_s15, 4  }
 0x2b7   :  { %13 = sbr.rel (!%p11_p4) target bundleno = 1 (0x1), region = 66 }

</bundles_post_ra>
